<compile_context>
chip_gen: v6e
topology: v6e:2x2x1
jax: 0.10.0
libtpu: 0.0.40
codegen_flags: <defaults>
</compile_context>

<pallas_src>
import functools

import jax
import jax.numpy as jnp
from jax import lax
from jax.experimental import pallas as pl
from jax.experimental.pallas import tpu as pltpu


# ---------------------------------------------------------------------------
# Kernel A: grouped KxK conv + bias + ReLU (one image per grid step, NHWC).
# ---------------------------------------------------------------------------
def _conv_relu_kernel(xp_ref, w_ref, b_ref, y_ref, *, Ho, Wo, KH, KW, Cr):
    # xp_ref: (1, Ho+KH-1, Wo+KW-1, Cin)  padded input, native dtype
    # w_ref : (KH*KW, Cin, Cr) f32, block-diagonal across groups*radix
    # b_ref : (1, Cr) f32
    # y_ref : (1, Ho, Wo, Cr)
    bias = b_ref[...]                                     # (1, Cr) f32, hoisted
    w_taps = [w_ref[p] for p in range(KH * KW)]           # hoisted (Cin, Cr) loads

    def row_body(h, carry):
        acc = jnp.zeros((Wo, Cr), jnp.float32)
        for kh in range(KH):
            # One padded input row plane, upcast only after the (native-dtype) load.
            xplane = xp_ref[0, h + kh].astype(jnp.float32)          # (Wp, Cin)
            for kw in range(KW):
                xrow = xplane[kw:kw + Wo, :]                        # (Wo, Cin)
                acc = acc + jnp.dot(xrow, w_taps[kh * KW + kw],
                                    preferred_element_type=jnp.float32)
        y_ref[0, h] = jnp.maximum(acc + bias, 0.0).astype(y_ref.dtype)
        return carry

    lax.fori_loop(0, Ho, row_body, 0)


# ---------------------------------------------------------------------------
# Kernel B: split-sum + GAP (grid reduction over spatial tiles) fused with the
#           attention MLP (fc1 -> ReLU -> fc2 -> rSoftMax) at finalize.
# ---------------------------------------------------------------------------
def _gap_attn_kernel(y_ref, w1_ref, b1_ref, w2_ref, b2_ref, att_ref, acc_ref, *,
                     channels, radix, inv_hw):
    k = pl.program_id(1)

    @pl.when(k == 0)
    def _init():
        acc_ref[...] = jnp.zeros_like(acc_ref)

    # Accumulate spatial partial sums for all channels*radix lanes (pure VPU adds;
    # the divide is hoisted to the finalize step as a multiply by 1/(H*W)).
    blk = y_ref[0].astype(jnp.float32)                    # (ts, Cr)
    acc_ref[...] += jnp.sum(blk, axis=0, keepdims=True)   # (1, Cr)

    @pl.when(k == pl.num_programs(1) - 1)
    def _finalize():
        s = acc_ref[...]                                  # (1, Cr) spatial sums
        gap = s[:, 0:channels]
        for r in range(1, radix):
            gap = gap + s[:, r * channels:(r + 1) * channels]
        gap = gap * inv_hw                                # (1, C) == mean over H*W

        h = jnp.dot(gap, w1_ref[...], preferred_element_type=jnp.float32) + b1_ref[...]
        h = jnp.maximum(h, 0.0)                           # (1, inter)
        logits = (jnp.dot(h, w2_ref[...], preferred_element_type=jnp.float32)
                  + b2_ref[...])                          # (1, Cr), radix-major order

        if radix > 1:
            parts = [logits[:, r * channels:(r + 1) * channels] for r in range(radix)]
            m = parts[0]
            for p_ in parts[1:]:
                m = jnp.maximum(m, p_)
            exps = [jnp.exp(p_ - m) for p_ in parts]
            den = exps[0]
            for e in exps[1:]:
                den = den + e
            inv = 1.0 / den
            for r in range(radix):
                att_ref[0, :, r * channels:(r + 1) * channels] = (
                    exps[r] * inv).astype(att_ref.dtype)
        else:
            att_ref[0] = jax.nn.sigmoid(logits).astype(att_ref.dtype)


# ---------------------------------------------------------------------------
# Kernel C: attention-weighted sum over the radix splits.
# ---------------------------------------------------------------------------
def _apply_attn_kernel(y_ref, att_ref, o_ref, *, channels, radix):
    y = y_ref[0].astype(jnp.float32)                      # (ts, Cr)
    a = att_ref[0].astype(jnp.float32)                    # (1, Cr)
    out = y[:, 0:channels] * a[:, 0:channels]
    for r in range(1, radix):
        sl = slice(r * channels, (r + 1) * channels)
        out = out + y[:, sl] * a[:, sl]
    o_ref[...] = out[None].astype(o_ref.dtype)


def _pick_spatial_tile(hw, max_tile=2048):
    if hw <= max_tile:
        return hw
    for t in range(max_tile, 0, -1):
        if hw % t == 0 and t % 8 == 0:
            return t
    return hw


def splat_conv2d(x, params, *, radix=2, cardinality=1, padding=(1, 1),
                 spatial_tile=None):
    """Pallas TPU forward pass of SplAtConv2d (x: NCHW, PyTorch-layout params)."""
    w_conv = params["w_conv"].astype(jnp.float32)
    b_conv = params["b_conv"].astype(jnp.float32)
    w_fc1 = params["w_fc1"].astype(jnp.float32)
    b_fc1 = params["b_fc1"].astype(jnp.float32)
    w_fc2 = params["w_fc2"].astype(jnp.float32)
    b_fc2 = params["b_fc2"].astype(jnp.float32)

    N, Cin, H, W = x.shape
    Cr, _, KH, KW = w_conv.shape
    channels = Cr // radix
    groups_total = cardinality * radix
    inter = w_fc1.shape[0]
    ph, pw = padding
    Ho = H + 2 * ph - KH + 1
    Wo = W + 2 * pw - KW + 1
    itemsize = int(jnp.dtype(x.dtype).itemsize)

    # ---- layout plumbing (no compute): NCHW -> NHWC, spatial zero padding ----
    x_nhwc = jnp.transpose(x, (0, 2, 3, 1))
    x_pad = jnp.pad(x_nhwc, ((0, 0), (ph, ph), (pw, pw), (0, 0)))
    Hp, Wp = H + 2 * ph, W + 2 * pw

    # Grouped conv as a dense matmul with a block-diagonal (Cin, Cr) weight per tap.
    cin_pg, cout_pg = Cin // groups_total, Cr // groups_total
    w_mat = jnp.zeros((KH * KW, Cin, Cr), jnp.float32)
    for p in range(KH * KW):
        kh, kw = p // KW, p % KW
        for g in range(groups_total):
            blk = w_conv[g * cout_pg:(g + 1) * cout_pg, :, kh, kw]     # (cout_pg, cin_pg)
            w_mat = w_mat.at[p, g * cin_pg:(g + 1) * cin_pg,
                             g * cout_pg:(g + 1) * cout_pg].set(blk.T)

    # fc1 / fc2 (grouped 1x1 convs) as dense block-diagonal matrices.
    cin1, cout1 = channels // cardinality, inter // cardinality
    w1_mat = jnp.zeros((channels, inter), jnp.float32)
    for g in range(cardinality):
        w1_mat = w1_mat.at[g * cin1:(g + 1) * cin1, g * cout1:(g + 1) * cout1].set(
            w_fc1[g * cout1:(g + 1) * cout1, :, 0, 0].T)

    cin2, cout2 = inter // cardinality, Cr // cardinality
    w2_mat = jnp.zeros((inter, Cr), jnp.float32)
    for g in range(cardinality):
        w2_mat = w2_mat.at[g * cin2:(g + 1) * cin2, g * cout2:(g + 1) * cout2].set(
            w_fc2[g * cout2:(g + 1) * cout2, :, 0, 0].T)

    # Permute fc2 output channels to radix-major order so the in-kernel rSoftMax is a
    # plain slice-wise softmax over radix (matches torch's view/transpose exactly).
    cpc = channels // cardinality
    perm = [c * radix * cpc + r * cpc + kk
            for r in range(radix) for c in range(cardinality) for kk in range(cpc)]
    perm = jnp.asarray(perm, jnp.int32)
    w2_perm = w2_mat[:, perm]
    b2_perm = b_fc2[perm]

    b_conv2 = b_conv.reshape(1, Cr)
    b1_2 = b_fc1.reshape(1, inter)
    b2_2 = b2_perm.reshape(1, Cr)

    # ---- Kernel A: grouped conv + bias + ReLU --------------------------------
    conv_kernel = functools.partial(_conv_relu_kernel, Ho=Ho, Wo=Wo, KH=KH, KW=KW, Cr=Cr)
    y = pl.pallas_call(
        conv_kernel,
        out_shape=jax.ShapeDtypeStruct((N, Ho, Wo, Cr), x.dtype),
        grid_spec=pltpu.PrefetchScalarGridSpec(
            num_scalar_prefetch=0,
            grid=(N,),
            in_specs=[
                pl.BlockSpec((1, Hp, Wp, Cin), lambda n: (n, 0, 0, 0)),
                pl.BlockSpec((KH * KW, Cin, Cr), lambda n: (0, 0, 0)),
                pl.BlockSpec((1, Cr), lambda n: (0, 0)),
            ],
            out_specs=pl.BlockSpec((1, Ho, Wo, Cr), lambda n: (n, 0, 0, 0)),
        ),
        compiler_params=pltpu.CompilerParams(
            dimension_semantics=("parallel",),
            vmem_limit_bytes=32 * 1024 * 1024),
        cost_estimate=pl.CostEstimate(
            flops=int(2 * N * Ho * Wo * Cin * Cr * KH * KW),
            transcendentals=0,
            bytes_accessed=int(N * Hp * Wp * Cin * itemsize + N * Ho * Wo * Cr * itemsize)),
    )(x_pad, w_mat, b_conv2)

    # ---- Kernel B: split-sum + GAP (reduction grid) + fc1/fc2 + rSoftMax -----
    S = Ho * Wo
    y_flat = y.reshape(N, S, Cr)                     # contiguous -> free metadata reshape
    ts = spatial_tile if spatial_tile is not None else _pick_spatial_tile(S)
    assert S % ts == 0 and (ts % 8 == 0 or ts == S), (S, ts)
    n_s = S // ts

    gap_kernel = functools.partial(_gap_attn_kernel, channels=channels, radix=radix,
                                   inv_hw=1.0 / float(S))
    att = pl.pallas_call(
        gap_kernel,
        out_shape=jax.ShapeDtypeStruct((N, 1, Cr), jnp.float32),
        grid_spec=pltpu.PrefetchScalarGridSpec(
            num_scalar_prefetch=0,
            grid=(N, n_s),
            in_specs=[
                pl.BlockSpec((1, ts, Cr), lambda n, k: (n, k, 0)),
                pl.BlockSpec((channels, inter), lambda n, k: (0, 0)),
                pl.BlockSpec((1, inter), lambda n, k: (0, 0)),
                pl.BlockSpec((inter, Cr), lambda n, k: (0, 0)),
                pl.BlockSpec((1, Cr), lambda n, k: (0, 0)),
            ],
            out_specs=pl.BlockSpec((1, 1, Cr), lambda n, k: (n, 0, 0)),
            scratch_shapes=[pltpu.VMEM((1, Cr), jnp.float32)],
        ),
        compiler_params=pltpu.CompilerParams(
            dimension_semantics=("parallel", "arbitrary"),
            vmem_limit_bytes=32 * 1024 * 1024),
        cost_estimate=pl.CostEstimate(
            flops=int(N * S * Cr + 2 * N * (channels * inter + inter * Cr)),
            transcendentals=int(N * Cr),
            bytes_accessed=int(N * S * Cr * itemsize + N * Cr * 4)),
    )(y_flat, w1_mat, b1_2, w2_perm, b2_2)

    # ---- Kernel C: out = sum_r attention_r * split_r -------------------------
    apply_kernel = functools.partial(_apply_attn_kernel, channels=channels, radix=radix)
    out_flat = pl.pallas_call(
        apply_kernel,
        out_shape=jax.ShapeDtypeStruct((N, S, channels), x.dtype),
        grid_spec=pltpu.PrefetchScalarGridSpec(
            num_scalar_prefetch=0,
            grid=(N, n_s),
            in_specs=[
                pl.BlockSpec((1, ts, Cr), lambda n, k: (n, k, 0)),
                pl.BlockSpec((1, 1, Cr), lambda n, k: (n, 0, 0)),
            ],
            out_specs=pl.BlockSpec((1, ts, channels), lambda n, k: (n, k, 0)),
        ),
        compiler_params=pltpu.CompilerParams(
            dimension_semantics=("parallel", "parallel"),
            vmem_limit_bytes=32 * 1024 * 1024),
        cost_estimate=pl.CostEstimate(
            flops=int(2 * N * S * Cr),
            transcendentals=0,
            bytes_accessed=int(N * S * Cr * itemsize + N * S * channels * itemsize)),
    )(y_flat, att)

    return jnp.transpose(out_flat.reshape(N, Ho, Wo, channels), (0, 3, 1, 2))


# ---------------------------------------------------------------------------
# Pure-JAX reference (mirrors the PyTorch SplAtConv2d.forward, norm_layer=None).
# ---------------------------------------------------------------------------
def splat_conv2d_reference(x, params, *, radix=2, cardinality=1, padding=(1, 1)):
    hp = lax.Precision.HIGHEST
    w_conv, b_conv = params["w_conv"], params["b_conv"]
    w_fc1, b_fc1 = params["w_fc1"], params["b_fc1"]
    w_fc2, b_fc2 = params["w_fc2"], params["b_fc2"]
    Cr = w_conv.shape[0]
    channels = Cr // radix
    batch = x.shape[0]

    y = lax.conv_general_dilated(
        x, w_conv, window_strides=(1, 1),
        padding=((padding[0], padding[0]), (padding[1], padding[1])),
        dimension_numbers=("NCHW", "OIHW", "NCHW"),
        feature_group_count=cardinality * radix, precision=hp)
    y = jnp.maximum(y + b_conv[None, :, None, None], 0.0)

    if radix > 1:
        splits = [y[:, r * channels:(r + 1) * channels] for r in range(radix)]
        gap = splits[0]
        for s in splits[1:]:
            gap = gap + s
    else:
        splits = [y]
        gap = y
    gap = jnp.mean(gap, axis=(2, 3), keepdims=True)

    h = lax.conv_general_dilated(gap, w_fc1, (1, 1), "VALID",
                                 dimension_numbers=("NCHW", "OIHW", "NCHW"),
                                 feature_group_count=cardinality, precision=hp)
    h = jnp.maximum(h + b_fc1[None, :, None, None], 0.0)
    logits = lax.conv_general_dilated(h, w_fc2, (1, 1), "VALID",
                                      dimension_numbers=("NCHW", "OIHW", "NCHW"),
                                      feature_group_count=cardinality, precision=hp)
    logits = logits + b_fc2[None, :, None, None]

    lf = logits.reshape(batch, -1)
    if radix > 1:
        l4 = lf.reshape(batch, cardinality, radix, -1)
        l4 = jnp.transpose(l4, (0, 2, 1, 3))
        att = jax.nn.softmax(l4, axis=1).reshape(batch, -1)
    else:
        att = jax.nn.sigmoid(lf)
    att = att.reshape(batch, -1, 1, 1)

    if radix > 1:
        attens = [att[:, r * channels:(r + 1) * channels] for r in range(radix)]
        out = attens[0] * splits[0]
        for a, s in zip(attens[1:], splits[1:]):
            out = out + a * s
    else:
        out = att * y
    return out


if __name__ == "__main__":
    key = jax.random.PRNGKey(0)
    N, Cin, H, W = 2, 4, 16, 16
    radix, cardinality = 2, 1
    channels = 4
    reduction_factor = 4
    inter = max(Cin * radix // reduction_factor, 32)      # as in the PyTorch module
    Cr = channels * radix
    KH = KW = 3
    groups_total = cardinality * radix

    ks = jax.random.split(key, 7)
    x = jax.random.normal(ks[0], (N, Cin, H, W), jnp.float32)
    params = {
        "w_conv": jax.random.normal(ks[1], (Cr, Cin // groups_total, KH, KW), jnp.float32) * 0.3,
        "b_conv": jax.random.normal(ks[2], (Cr,), jnp.float32) * 0.1,
        "w_fc1": jax.random.normal(ks[3], (inter, channels // cardinality, 1, 1), jnp.float32) * 0.3,
        "b_fc1": jax.random.normal(ks[4], (inter,), jnp.float32) * 0.1,
        "w_fc2": jax.random.normal(ks[5], (Cr, inter // cardinality, 1, 1), jnp.float32) * 0.3,
        "b_fc2": jax.random.normal(ks[6], (Cr,), jnp.float32) * 0.1,
    }

    out = splat_conv2d(x, params, radix=radix, cardinality=cardinality,
                       padding=(1, 1), spatial_tile=64)   # 4 reduction steps over 16x16
    out = jax.block_until_ready(out)

    ref = splat_conv2d_reference(x, params, radix=radix, cardinality=cardinality,
                                 padding=(1, 1))
    assert out.shape == (N, channels, H, W), out.shape
    max_err = float(jnp.max(jnp.abs(out - ref)))
    assert jnp.allclose(out, ref, atol=1e-2, rtol=1e-2), max_err
    print("KERNEL_OK")
</pallas_src>

<mosaic_0001>
module attributes {stable_mosaic.version = 11 : i64} {
  func.func @_conv_relu_kernel(%arg0: i32, %arg1: memref<1x18x18x4xf32, #tpu.memory_space<vmem>>, %arg2: memref<9x4x8xf32, #tpu.memory_space<vmem>>, %arg3: memref<1x8xf32, #tpu.memory_space<vmem>>, %arg4: memref<1x16x16x8xf32, #tpu.memory_space<vmem>>) attributes {dimension_semantics = [#tpu.dimension_semantics<parallel>], iteration_bounds = array<i64: 2>, scalar_prefetch = 0 : i64, scratch_operands = 0 : i64, tpu.core_type = #tpu.core_type<tc>, window_params = [{transform_indices = @transform_0, window_bounds = array<i64: 1, 18, 18, 4>}, {pipeline_mode = #tpu.pipeline_mode<synchronous>, transform_indices = @transform_1, window_bounds = array<i64: 9, 4, 8>}, {pipeline_mode = #tpu.pipeline_mode<synchronous>, transform_indices = @transform_2, window_bounds = array<i64: 1, 8>}, {transform_indices = @transform_3, window_bounds = array<i64: 1, 16, 16, 8>}]} {
    %c0 = arith.constant 0 : index
    %c0_0 = arith.constant 0 : index
    %0 = vector.load %arg3[%c0, %c0_0] : memref<1x8xf32, #tpu.memory_space<vmem>>, vector<1x8xf32>
    %c0_1 = arith.constant 0 : index
    %c0_2 = arith.constant 0 : index
    %c0_3 = arith.constant 0 : index
    %1 = vector.load %arg2[%c0_1, %c0_2, %c0_3] : memref<9x4x8xf32, #tpu.memory_space<vmem>>, vector<1x4x8xf32>
    %2 = vector.shape_cast %1 : vector<1x4x8xf32> to vector<4x8xf32>
    %c1 = arith.constant 1 : index
    %c0_4 = arith.constant 0 : index
    %c0_5 = arith.constant 0 : index
    %3 = vector.load %arg2[%c1, %c0_4, %c0_5] : memref<9x4x8xf32, #tpu.memory_space<vmem>>, vector<1x4x8xf32>
    %4 = vector.shape_cast %3 : vector<1x4x8xf32> to vector<4x8xf32>
    %c2 = arith.constant 2 : index
    %c0_6 = arith.constant 0 : index
    %c0_7 = arith.constant 0 : index
    %5 = vector.load %arg2[%c2, %c0_6, %c0_7] : memref<9x4x8xf32, #tpu.memory_space<vmem>>, vector<1x4x8xf32>
    %6 = vector.shape_cast %5 : vector<1x4x8xf32> to vector<4x8xf32>
    %c3 = arith.constant 3 : index
    %c0_8 = arith.constant 0 : index
    %c0_9 = arith.constant 0 : index
    %7 = vector.load %arg2[%c3, %c0_8, %c0_9] : memref<9x4x8xf32, #tpu.memory_space<vmem>>, vector<1x4x8xf32>
    %8 = vector.shape_cast %7 : vector<1x4x8xf32> to vector<4x8xf32>
    %c4 = arith.constant 4 : index
    %c0_10 = arith.constant 0 : index
    %c0_11 = arith.constant 0 : index
    %9 = vector.load %arg2[%c4, %c0_10, %c0_11] : memref<9x4x8xf32, #tpu.memory_space<vmem>>, vector<1x4x8xf32>
    %10 = vector.shape_cast %9 : vector<1x4x8xf32> to vector<4x8xf32>
    %c5 = arith.constant 5 : index
    %c0_12 = arith.constant 0 : index
    %c0_13 = arith.constant 0 : index
    %11 = vector.load %arg2[%c5, %c0_12, %c0_13] : memref<9x4x8xf32, #tpu.memory_space<vmem>>, vector<1x4x8xf32>
    %12 = vector.shape_cast %11 : vector<1x4x8xf32> to vector<4x8xf32>
    %c6 = arith.constant 6 : index
    %c0_14 = arith.constant 0 : index
    %c0_15 = arith.constant 0 : index
    %13 = vector.load %arg2[%c6, %c0_14, %c0_15] : memref<9x4x8xf32, #tpu.memory_space<vmem>>, vector<1x4x8xf32>
    %14 = vector.shape_cast %13 : vector<1x4x8xf32> to vector<4x8xf32>
    %c7 = arith.constant 7 : index
    %c0_16 = arith.constant 0 : index
    %c0_17 = arith.constant 0 : index
    %15 = vector.load %arg2[%c7, %c0_16, %c0_17] : memref<9x4x8xf32, #tpu.memory_space<vmem>>, vector<1x4x8xf32>
    %16 = vector.shape_cast %15 : vector<1x4x8xf32> to vector<4x8xf32>
    %c8 = arith.constant 8 : index
    %c0_18 = arith.constant 0 : index
    %c0_19 = arith.constant 0 : index
    %17 = vector.load %arg2[%c8, %c0_18, %c0_19] : memref<9x4x8xf32, #tpu.memory_space<vmem>>, vector<1x4x8xf32>
    %18 = vector.shape_cast %17 : vector<1x4x8xf32> to vector<4x8xf32>
    %c0_i32 = arith.constant 0 : i32
    %c16_i32 = arith.constant 16 : i32
    %19 = arith.addi %c0_i32, %c16_i32 : i32
    %c1_i32 = arith.constant 1 : i32
    scf.for %arg5 = %c0_i32 to %19 step %c1_i32  : i32 {
      %cst = arith.constant 0.000000e+00 : f32
      %20 = vector.broadcast %cst : f32 to vector<16x8xf32>
      %c0_i32_21 = arith.constant 0 : i32
      %21 = arith.addi %arg5, %c0_i32_21 : i32
      %c0_22 = arith.constant 0 : index
      %22 = arith.index_cast %21 : i32 to index
      %c0_23 = arith.constant 0 : index
      %c0_24 = arith.constant 0 : index
      %23 = vector.load %arg1[%c0_22, %22, %c0_23, %c0_24] : memref<1x18x18x4xf32, #tpu.memory_space<vmem>>, vector<1x1x18x4xf32>
      %24 = vector.shape_cast %23 : vector<1x1x18x4xf32> to vector<18x4xf32>
      %25 = vector.extract_strided_slice %24 {offsets = [0, 0], sizes = [16, 4], strides = [1, 1]} : vector<18x4xf32> to vector<16x4xf32>
      %cst_25 = arith.constant dense<0.000000e+00> : vector<16x8xf32>
      %26 = tpu.matmul %25, %2, %cst_25 {dimension_numbers = #tpu.dot_dimension_numbers<[1], [0], [0], [1], [0, 0, 1, 1], [], []>} : vector<16x4xf32>, vector<4x8xf32>, vector<16x8xf32> -> vector<16x8xf32>
      %27 = arith.addf %20, %26 : vector<16x8xf32>
      %28 = vector.extract_strided_slice %24 {offsets = [1, 0], sizes = [16, 4], strides = [1, 1]} : vector<18x4xf32> to vector<16x4xf32>
      %cst_26 = arith.constant dense<0.000000e+00> : vector<16x8xf32>
      %29 = tpu.matmul %28, %4, %cst_26 {dimension_numbers = #tpu.dot_dimension_numbers<[1], [0], [0], [1], [0, 0, 1, 1], [], []>} : vector<16x4xf32>, vector<4x8xf32>, vector<16x8xf32> -> vector<16x8xf32>
      %30 = arith.addf %27, %29 : vector<16x8xf32>
      %31 = vector.extract_strided_slice %24 {offsets = [2, 0], sizes = [16, 4], strides = [1, 1]} : vector<18x4xf32> to vector<16x4xf32>
      %cst_27 = arith.constant dense<0.000000e+00> : vector<16x8xf32>
      %32 = tpu.matmul %31, %6, %cst_27 {dimension_numbers = #tpu.dot_dimension_numbers<[1], [0], [0], [1], [0, 0, 1, 1], [], []>} : vector<16x4xf32>, vector<4x8xf32>, vector<16x8xf32> -> vector<16x8xf32>
      %33 = arith.addf %30, %32 : vector<16x8xf32>
      %c1_i32_28 = arith.constant 1 : i32
      %34 = arith.addi %arg5, %c1_i32_28 : i32
      %c0_29 = arith.constant 0 : index
      %35 = arith.index_cast %34 : i32 to index
      %c0_30 = arith.constant 0 : index
      %c0_31 = arith.constant 0 : index
      %36 = vector.load %arg1[%c0_29, %35, %c0_30, %c0_31] : memref<1x18x18x4xf32, #tpu.memory_space<vmem>>, vector<1x1x18x4xf32>
      %37 = vector.shape_cast %36 : vector<1x1x18x4xf32> to vector<18x4xf32>
      %38 = vector.extract_strided_slice %37 {offsets = [0, 0], sizes = [16, 4], strides = [1, 1]} : vector<18x4xf32> to vector<16x4xf32>
      %cst_32 = arith.constant dense<0.000000e+00> : vector<16x8xf32>
      %39 = tpu.matmul %38, %8, %cst_32 {dimension_numbers = #tpu.dot_dimension_numbers<[1], [0], [0], [1], [0, 0, 1, 1], [], []>} : vector<16x4xf32>, vector<4x8xf32>, vector<16x8xf32> -> vector<16x8xf32>
      %40 = arith.addf %33, %39 : vector<16x8xf32>
      %41 = vector.extract_strided_slice %37 {offsets = [1, 0], sizes = [16, 4], strides = [1, 1]} : vector<18x4xf32> to vector<16x4xf32>
      %cst_33 = arith.constant dense<0.000000e+00> : vector<16x8xf32>
      %42 = tpu.matmul %41, %10, %cst_33 {dimension_numbers = #tpu.dot_dimension_numbers<[1], [0], [0], [1], [0, 0, 1, 1], [], []>} : vector<16x4xf32>, vector<4x8xf32>, vector<16x8xf32> -> vector<16x8xf32>
      %43 = arith.addf %40, %42 : vector<16x8xf32>
      %44 = vector.extract_strided_slice %37 {offsets = [2, 0], sizes = [16, 4], strides = [1, 1]} : vector<18x4xf32> to vector<16x4xf32>
      %cst_34 = arith.constant dense<0.000000e+00> : vector<16x8xf32>
      %45 = tpu.matmul %44, %12, %cst_34 {dimension_numbers = #tpu.dot_dimension_numbers<[1], [0], [0], [1], [0, 0, 1, 1], [], []>} : vector<16x4xf32>, vector<4x8xf32>, vector<16x8xf32> -> vector<16x8xf32>
      %46 = arith.addf %43, %45 : vector<16x8xf32>
      %c2_i32 = arith.constant 2 : i32
      %47 = arith.addi %arg5, %c2_i32 : i32
      %c0_35 = arith.constant 0 : index
      %48 = arith.index_cast %47 : i32 to index
      %c0_36 = arith.constant 0 : index
      %c0_37 = arith.constant 0 : index
      %49 = vector.load %arg1[%c0_35, %48, %c0_36, %c0_37] : memref<1x18x18x4xf32, #tpu.memory_space<vmem>>, vector<1x1x18x4xf32>
      %50 = vector.shape_cast %49 : vector<1x1x18x4xf32> to vector<18x4xf32>
      %51 = vector.extract_strided_slice %50 {offsets = [0, 0], sizes = [16, 4], strides = [1, 1]} : vector<18x4xf32> to vector<16x4xf32>
      %cst_38 = arith.constant dense<0.000000e+00> : vector<16x8xf32>
      %52 = tpu.matmul %51, %14, %cst_38 {dimension_numbers = #tpu.dot_dimension_numbers<[1], [0], [0], [1], [0, 0, 1, 1], [], []>} : vector<16x4xf32>, vector<4x8xf32>, vector<16x8xf32> -> vector<16x8xf32>
      %53 = arith.addf %46, %52 : vector<16x8xf32>
      %54 = vector.extract_strided_slice %50 {offsets = [1, 0], sizes = [16, 4], strides = [1, 1]} : vector<18x4xf32> to vector<16x4xf32>
      %cst_39 = arith.constant dense<0.000000e+00> : vector<16x8xf32>
      %55 = tpu.matmul %54, %16, %cst_39 {dimension_numbers = #tpu.dot_dimension_numbers<[1], [0], [0], [1], [0, 0, 1, 1], [], []>} : vector<16x4xf32>, vector<4x8xf32>, vector<16x8xf32> -> vector<16x8xf32>
      %56 = arith.addf %53, %55 : vector<16x8xf32>
      %57 = vector.extract_strided_slice %50 {offsets = [2, 0], sizes = [16, 4], strides = [1, 1]} : vector<18x4xf32> to vector<16x4xf32>
      %cst_40 = arith.constant dense<0.000000e+00> : vector<16x8xf32>
      %58 = tpu.matmul %57, %18, %cst_40 {dimension_numbers = #tpu.dot_dimension_numbers<[1], [0], [0], [1], [0, 0, 1, 1], [], []>} : vector<16x4xf32>, vector<4x8xf32>, vector<16x8xf32> -> vector<16x8xf32>
      %59 = arith.addf %56, %58 : vector<16x8xf32>
      %60 = vector.broadcast %0 : vector<1x8xf32> to vector<16x8xf32>
      %61 = arith.addf %59, %60 : vector<16x8xf32>
      %cst_41 = arith.constant 0.000000e+00 : f32
      %62 = vector.broadcast %cst_41 : f32 to vector<16x8xf32>
      %63 = arith.maximumf %61, %62 : vector<16x8xf32>
      %c0_42 = arith.constant 0 : index
      %64 = arith.index_cast %arg5 : i32 to index
      %c0_43 = arith.constant 0 : index
      %c0_44 = arith.constant 0 : index
      %65 = vector.load %arg4[%c0_42, %64, %c0_43, %c0_44] : memref<1x16x16x8xf32, #tpu.memory_space<vmem>>, vector<1x1x16x8xf32>
      %66 = vector.shape_cast %65 : vector<1x1x16x8xf32> to vector<16x8xf32>
      %67 = vector.shape_cast %63 : vector<16x8xf32> to vector<1x1x16x8xf32>
      tpu.vector_store %arg4[%c0_42, %64, %c0_43, %c0_44], %67 {strides = array<i32>} : memref<1x16x16x8xf32, #tpu.memory_space<vmem>>, vector<1x1x16x8xf32>,
    }
    %c16_i32_20 = arith.constant 16 : i32
    return
  }
  func.func @transform_0(%arg0: i32) -> (i32, i32, i32, i32) {
    %c0_i32 = arith.constant 0 : i32
    %c0_i32_0 = arith.constant 0 : i32
    %c0_i32_1 = arith.constant 0 : i32
    %c0_i32_2 = arith.constant 0 : i32
    return %arg0, %c0_i32, %c0_i32_0, %c0_i32_1 : i32, i32, i32, i32
  }
  func.func @transform_1(%arg0: i32) -> (i32, i32, i32) {
    %c0_i32 = arith.constant 0 : i32
    %c0_i32_0 = arith.constant 0 : i32
    %c0_i32_1 = arith.constant 0 : i32
    %c0_i32_2 = arith.constant 0 : i32
    return %c0_i32, %c0_i32_0, %c0_i32_1 : i32, i32, i32
  }
  func.func @transform_2(%arg0: i32) -> (i32, i32) {
    %c0_i32 = arith.constant 0 : i32
    %c0_i32_0 = arith.constant 0 : i32
    %c0_i32_1 = arith.constant 0 : i32
    return %c0_i32, %c0_i32_0 : i32, i32
  }
  func.func @transform_3(%arg0: i32) -> (i32, i32, i32, i32) {
    %c0_i32 = arith.constant 0 : i32
    %c0_i32_0 = arith.constant 0 : i32
    %c0_i32_1 = arith.constant 0 : i32
    %c0_i32_2 = arith.constant 0 : i32
    return %arg0, %c0_i32, %c0_i32_0, %c0_i32_1 : i32, i32, i32, i32
  }
}

</mosaic_0001>

<bundles_post_ra>
// kernel: tpu_custom_call.1
= control target key start
LH: loop header
LB: loop body
LE: loop exit
PB: predicated region body
PF: predicated region fallthrough
CT: control target
= control target key end

     0   :  { %s1271_s12 = smov 0   ;;  %s1433_s0 = inlined_call_operand.vmem [shape: f32[2,18,18,4], index: 0, kind: input, shape index: {}]   ;;  %s1434_s1 = inlined_call_operand.vmem [shape: f32[9,4,8], index: 1, kind: input, shape index: {}]   ;;  %s1435_s2 = inlined_call_operand.vmem [shape: f32[1,8], index: 2, kind: input, shape index: {}]   ;;  %s1436_s3 = inlined_call_operand.vmem [shape: f32[2,16,16,8], index: 3, kind: output, shape index: {}]  }
   0x1 LB: > { %s1092_s13 = sadd.s32 4294967295, %s1245_s12   ;;  %p1096_p0 = scmp.ge.s32.totalorder %s1245_s12, 1  ;;  %s1245_s12 = sphi %s1271_s12, %s13_s12  }
   0x2   : > { %p137_p1 = scmp.lt.s32.totalorder %s1245_s12, 3 }
   0x4   : > { %p138_p2 = pnand %p1096_p0, %p137_p1 }
   0x5   : > { %p161_p3 = scmp.lt.s32.totalorder (!%p138_p2), %s1092_s13, 1  ;;  %s1339_s17 = smov (!%p138_p2), 0  }
   0x6   : > { %141 = sbr.rel (%p138_p2) target bundleno = 243 (0xf3), region = 32 }
   0xb   : > { %v1282_v0 = vld [vmem:[%s1435_s2] ss:$0 sm:$0xff]  ;;  %v1292_v2 = vld [vmem:[%s1434_s1 + $0x4] sm:$0xf]  ;;  %v1297_v3 = vld [vmem:[%s1434_s1 + $0x8] sm:$0xf] }
   0xc   : > { %v1287_v1 = vld [vmem:[%s1434_s1] sm:$0xf]  ;;  %v1302_v4 = vld [vmem:[%s1434_s1 + $0xc] sm:$0xf]  ;;  %s1438_s13 = smov (!%p161_p3, %s1092_s13), 1 }
   0xd   : > { %v1307_v5 = vld [vmem:[%s1434_s1 + $0x10] sm:$0xf]  ;;  %v1312_v6 = vld [vmem:[%s1434_s1 + $0x14] sm:$0xf]  ;;  %v1317_v7 = vld [vmem:[%s1434_s1 + $0x18] sm:$0xf] }
   0xe   : > { %v1322_v8 = vld [vmem:[%s1434_s1 + $0x1c] sm:$0xf]  ;;  %v1327_v9 = vld [vmem:[%s1434_s1 + $0x20] sm:$0xf]  ;;  %s1218_s7 = smul.u32 432, %s1438_s13  ;;  %s1145_s8 = sshll.u32 %s1438_s13, 8 }
   0xf   : > { %s1332_s11 = scalar_lea.vmem %s1436_s3, %s1145_s8 }
  0x10   : > { %s1337_s16 = scalar_lea.vmem %s1433_s0, %s1218_s7 }
  0x11 LB: >> { %vm214_vm0 = vcmask 1043456   ;;  %s195_s13 = smul.u32 24, %s1249_s17  ;;  %vm209_vm1 = vcmask 31744   ;;  %vm203_vm2 = vcmask 1046528   ;;  %vm375_vm3 = vcmask 1045504   ;;  %s1142_s19 = sshll.u32 %s1249_s17, 4  ;;  %s1249_s17 = sphi %s1339_s17, %s194_s17  }
  0x12   : >> { %1173 = vmatprep.subr.msk.mxu0 %vm214_vm0, %v1292_v2  ;;  %1178 = vmatprep.subr.msk.mxu1 %vm214_vm0, %v1287_v1  ;;  %s1018_s20 = scalar_lea.vmem %s1332_s11, %s1142_s19  ;;  %vm1019_vm4 = vcmask 64512   ;;  %s194_s17 = sadd.s32 1, %s1249_s17  }
  0x13   : >> { %1174 = vmatpush3.msk.msra.mxu0 %vm214_vm0, %v1292_v2  ;;  %1179 = vmatpush3.msk.msra.mxu1 %vm214_vm0, %v1287_v1  ;;  %s1358_s18 = scalar_lea.vmem %s1337_s16, %s195_s13  ;;  %p191_p4 = scmp.ge.s32.totalorder %s194_s17, 16  }
  0x14   : >> { %1183 = vmatprep.subr.msk.mxu0 %vm214_vm0, %v1297_v3  ;;  %1188 = vmatprep.subr.msk.mxu1 %vm214_vm0, %v1302_v4  ;;  %v197_v10 = vld [vmem:[%s1358_s18] sm:$0xff]  ;;  %v198_v11 = vld [vmem:[%s1358_s18 + $0x8] sm:$0xff]  ;;  %v199_v12 = vld [vmem:[%s1358_s18 + $0x10] sm:$0x3] }
  0x15   : >> { %v204_v13 = vrot.slane %v197_v10, 1  ;;  %v205_v14 = vrot.slane %v198_v11, 1  ;;  %1180 = vmatprep.mubr.msk.f32.mxu1 %vm209_vm1, %v197_v10  ;;  %v207_v15 = vrot.slane %v199_v12, 1  ;;  %v379_v16 = vrot.slane %v199_v12, 2  ;;  %v1117_v17 = vld [vmem:[%s1358_s18 + $0x18] sm:$0xff]  ;;  %v1118_v18 = vld [vmem:[%s1358_s18 + $0x20] sm:$0xff] }
  0x16   : >> { %1181 = vmatmul.mubr.msk.f32.vlgmr.msra.gmra.mxu1 %vm209_vm1, %v198_v11  ;;  %v376_v19 = vrot.slane %v197_v10, 2  ;;  %v377_v20 = vrot.slane %v198_v11, 2  ;;  %v558_v21 = vrot.slane %v1117_v17, 1  ;;  %v647_v22 = vrot.slane %v1117_v17, 2  ;;  %v1119_v23 = vld [vmem:[%s1358_s18 + $0x28] sm:$0x3] }
  0x17   : >> { %v206_v24 = vsel %vm203_vm2, %v204_v13, %v205_v14  ;;  %v208_v25 = vsel %vm203_vm2, %v205_v14, %v207_v15  ;;  %1189 = vmatpush3.msk.msra.mxu1 %vm214_vm0, %v1302_v4  ;;  %1190 = vmatprep.mubr.msk.f32.mxu1 %vm209_vm1, %v1117_v17  ;;  %v559_v26 = vrot.slane %v1118_v18, 1  ;;  %v648_v27 = vrot.slane %v1118_v18, 2  ;;  %v1129_v28 = vld [vmem:[%s1358_s18 + $0x30] sm:$0xff]  ;;  %v1130_v29 = vld [vmem:[%s1358_s18 + $0x38] sm:$0xff]  ;;  %v1131_v34 = vld [vmem:[%s1358_s18 + $0x40] sm:$0x3] }
  0x18   : >> { %1175 = vmatprep.mubr.msk.f32.mxu0 %vm209_vm1, %v206_v24  ;;  %v378_v30 = vsel %vm375_vm3, %v376_v19, %v377_v20  ;;  %1198 = vmatprep.subr.msk.mxu1 %vm214_vm0, %v1312_v6  ;;  %v650_v31 = vrot.slane %v1119_v23, 2  ;;  %v829_v33 = vrot.slane %v1129_v28, 1  ;;  %v380_v35 = vsel %vm375_vm3, %v377_v20, %v379_v16 }
  0x19   : >> { %1176 = vmatmul.mubr.msk.f32.vlgmr.msra.gmra.mxu0 %vm209_vm1, %v208_v25  ;;  %v649_v32 = vsel %vm375_vm3, %v647_v22, %v648_v27  ;;  %v561_v36 = vrot.slane %v1119_v23, 1  ;;  %v830_v37 = vrot.slane %v1130_v29, 1  ;;  %v560_v38 = vsel %vm203_vm2, %v558_v21, %v559_v26 }
  0x1a   : >> { %1184 = vmatpush3.msk.msra.mxu0 %vm214_vm0, %v1297_v3  ;;  %1185 = vmatprep.mubr.msk.f32.mxu0 %vm209_vm1, %v378_v30  ;;  %v651_v39 = vsel %vm375_vm3, %v648_v27, %v650_v31  ;;  %v832_v40 = vrot.slane %v1131_v34, 1  ;;  %v918_v43 = vrot.slane %v1129_v28, 2  ;;  %v919_v44 = vrot.slane %v1130_v29, 2 }
  0x1b   : >> { %1193 = vmatprep.subr.msk.mxu0 %vm214_vm0, %v1307_v5  ;;  %1191 = vmatmul.mubr.msk.f32.vlgmr.msra.gmra.mxu1 %vm209_vm1, %v1118_v18  ;;  %v831_v41 = vsel %vm203_vm2, %v829_v33, %v830_v37  ;;  %v562_v42 = vsel %vm203_vm2, %v559_v26, %v561_v36  ;;  %v921_v46 = vrot.slane %v1131_v34, 2 }
  0x1c   : >> { %1199 = vmatpush3.msk.msra.mxu1 %vm214_vm0, %v1312_v6  ;;  %1200 = vmatprep.mubr.msk.f32.mxu1 %vm209_vm1, %v649_v32  ;;  %v833_v45 = vsel %vm203_vm2, %v830_v37, %v832_v40  ;;  %v920_v47 = vsel %vm375_vm3, %v918_v43, %v919_v44 }
  0x1d   : >> { %1186 = vmatmul.mubr.msk.f32.vlgmr.msra.gmra.mxu0 %vm209_vm1, %v380_v35  ;;  %1208 = vmatprep.subr.msk.mxu1 %vm214_vm0, %v1322_v8  ;;  %v922_v48 = vsel %vm375_vm3, %v919_v44, %v921_v46 }
  0x1e   : >> { %1194 = vmatpush3.msk.msra.mxu0 %vm214_vm0, %v1307_v5  ;;  %1195 = vmatprep.mubr.msk.f32.mxu0 %vm209_vm1, %v560_v38 }
  0x1f   : >> { %1203 = vmatprep.subr.msk.mxu0 %vm214_vm0, %v1317_v7  ;;  %1201 = vmatmul.mubr.msk.f32.vlgmr.msra.gmra.mxu1 %vm209_vm1, %v651_v39 }
  0x20   : >> { %1209 = vmatpush3.msk.msra.mxu1 %vm214_vm0, %v1322_v8  ;;  %1210 = vmatprep.mubr.msk.f32.mxu1 %vm209_vm1, %v831_v41 }
  0x21   : >> { %1196 = vmatmul.mubr.msk.f32.vlgmr.msra.gmra.mxu0 %vm209_vm1, %v562_v42 }
  0x22   : >> { %1204 = vmatpush3.msk.msra.mxu0 %vm214_vm0, %v1317_v7  ;;  %1205 = vmatprep.mubr.msk.f32.mxu0 %vm209_vm1, %v1129_v28 }
  0x23   : >> { %1213 = vmatprep.subr.msk.mxu0 %vm214_vm0, %v1327_v9  ;;  %1211 = vmatmul.mubr.msk.f32.vlgmr.msra.gmra.mxu1 %vm209_vm1, %v833_v45 }
  0x25   : >> { %1206 = vmatmul.mubr.msk.f32.vlgmr.msra.gmra.mxu0 %vm209_vm1, %v1130_v29 }
  0x26   : >> { %1214 = vmatpush3.msk.msra.mxu0 %vm214_vm0, %v1327_v9  ;;  %1215 = vmatprep.mubr.msk.f32.mxu0 %vm209_vm1, %v920_v47 }
  0x29   : >> { %1216 = vmatmul.mubr.msk.f32.vlgmr.msra.gmra.mxu0 %vm209_vm1, %v922_v48 }
  0xd6   : >> { %v1182_v49 = vpop.f32.mrf.mxu1 }
  0xd8   : >> { %v366_v50 = vpop.f32.mrf.mxu1 }
  0xd9   : >> { %v1177_v51 = vpop.f32.mrf.mxu0 }
  0xda   : >> { %v372_v54 = vadd.f32 %v1182_v49, %v1177_v51 }
  0xdb   : >> { %v284_v52 = vpop.f32.mrf.mxu0  ;;  %v1192_v53 = vpop.f32.mrf.mxu1 }
  0xdc   : >> { %v367_v57 = vadd.f32 %v366_v50, %v284_v52 }
  0xdd   : >> { %v1187_v55 = vpop.f32.mrf.mxu0  ;;  %v546_v56 = vpop.f32.mrf.mxu1 }
  0xde   : >> { %v464_v58 = vadd.f32 %v1187_v55, %v372_v54 }
  0xdf   : >> { %v454_v59 = vpop.f32.mrf.mxu0  ;;  %v1202_v60 = vpop.f32.mrf.mxu1 }
  0xe0   : >> { %v556_v61 = vadd.f32 %v1192_v53, %v464_v58  ;;  %v463_v62 = vadd.f32 %v454_v59, %v367_v57 }
  0xe1   : >> { %v1197_v63 = vpop.f32.mrf.mxu0  ;;  %v725_v10 = vpop.f32.mrf.mxu1 }
  0xe2   : >> { %v555_v11 = vadd.f32 %v546_v56, %v463_v62  ;;  %v646_v12 = vadd.f32 %v1197_v63, %v556_v61 }
  0xe3   : >> { %v636_v13 = vpop.f32.mrf.mxu0  ;;  %v1212_v17 = vpop.f32.mrf.mxu1 }
  0xe4   : >> { %v735_v14 = vadd.f32 %v1202_v60, %v646_v12  ;;  %v645_v15 = vadd.f32 %v636_v13, %v555_v11 }
  0xe5   : >> { %v1207_v16 = vpop.f32.mrf.mxu0  ;;  %v907_v23 = vpop.f32.mrf.mxu1 }
  0xe6   : >> { %v734_v18 = vadd.f32 %v725_v10, %v645_v15  ;;  %v827_v19 = vadd.f32 %v1207_v16, %v735_v14 }
  0xe7   : >> { %v817_v20 = vpop.f32.mrf.mxu0 }
  0xe8   : >> { %v917_v21 = vadd.f32 %v1212_v17, %v827_v19  ;;  %v826_v22 = vadd.f32 %v817_v20, %v734_v18 }
  0xe9   : >> { %v1217_v24 = vpop.f32.mrf.mxu0 }
  0xea   : >> { %v916_v25 = vadd.f32 %v907_v23, %v826_v22  ;;  %v1006_v26 = vadd.f32 %v1217_v24, %v917_v21 }
  0xeb   : >> { %v996_v27 = vpop.f32.mrf.mxu0 }
  0xec   : >> { %v1014_v28 = vadd.f32 %v1282_v0, %v1006_v26  ;;  %v1005_v29 = vadd.f32 %v996_v27, %v916_v25 }
  0xee   : >> { %v1016_v30 = vmax.f32 %v1014_v28, 0.0  ;;  %v1013_v31 = vadd.f32 %v1282_v0, %v1005_v29  ;;  %193 = sbr.rel (!%p191_p4) target bundleno = 17 (0x11), region = 81 }
  0xf0   : >> { %1021 = vst.msk [vmem:[%s1018_s20 + $0x8] sm:$0xff] %vm1019_vm4, %v1016_v30  ;;  %v1015_v32 = vmax.f32 %v1013_v31, 0.0 }
  0xf2   : >> { %1020 = vst.msk [vmem:[%s1018_s20] sm:$0xff] %vm1019_vm4, %v1015_v32 }
  0xf3 PF: > { %s13_s12 = sadd.s32 1, %s1245_s12  }
  0xf4   : > { %p10_p5 = scmp.ge.s32.totalorder %s13_s12, 4  }
  0xf6   :  { %12 = sbr.rel (!%p10_p5) target bundleno = 1 (0x1), region = 92 }

</bundles_post_ra>
